<compile_context>
chip_gen: v6e
topology: v6e:2x2x1
jax: 0.10.0
libtpu: 0.0.40
codegen_flags: <defaults>
</compile_context>

<pallas_src>
import math

import jax
import jax.numpy as jnp
from jax.experimental import pallas as pl
from jax.experimental.pallas import tpu as pltpu


def _round_up(x, m):
    return ((x + m - 1) // m) * m


def _vmem_budget_bytes():
    """Usable VMEM per core: physical capacity minus headroom for Mosaic scratch."""
    cap = 64 << 20
    try:
        cap = int(pltpu.get_tpu_info().vmem_capacity_bytes)
    except Exception:
        pass
    headroom = max(8 << 20, cap // 8)  # ~8 MiB on v7x (64 MiB), ~16 MiB on v5e/v6e (128 MiB)
    return max(cap - headroom, 24 << 20)


def _select_tiles(M, D, H, Dout, xsize, msize, osize, budget, tile_m_req):
    """Pick (tile_m, tile_h) so the working set fits the VMEM budget.

    tile_h == H keeps both weights fully VMEM-resident (single-buffered);
    otherwise the hidden dim becomes an inner reduction grid axis and the weight
    slabs are streamed (double-buffered).
    """
    m_cap = _round_up(max(min(int(tile_m_req), M), 8), 8)
    m_cands = sorted(
        {m for m in (m_cap, 1024, 512, 256, 128, 64, 32, 16, 8) if m <= m_cap},
        reverse=True)
    h_cands = [H] + [th for th in range((H // 128) * 128, 0, -128)
                     if th != H and H % th == 0]

    def vmem_need(tm, th):
        wbuf = 1 if th == H else 2                      # resident: Buffered(1); streamed: 2x
        weights = wbuf * (D * th + th * Dout) * msize   # w1 slab + w2 slab
        biases = 2 * 2 * (th + Dout) * 4                # b1 + b2 (f32)
        x_tile = 2 * tm * D * xsize                     # streamed input tile (orig dtype)
        o_tile = 2 * tm * Dout * osize                  # streamed output tile
        inter = tm * th * (4 + msize)                   # f32 fc1/GELU slab + cast copy
        xcast = tm * D * msize                          # in-kernel cast of x tile
        acc = tm * Dout * 4                             # f32 accumulator scratch
        return weights + biases + x_tile + o_tile + inter + xcast + acc

    for th in h_cands:
        for tm in m_cands:
            if vmem_need(tm, th) <= budget:
                return tm, th
    # TODO(synk): for D/H so large that even the smallest (tile_m, tile_h) slab does not
    # fit the VMEM budget, a D-blocked fc1 accumulation would also be required.
    return m_cands[-1], h_cands[-1]


def _make_mlp_kernel(matmul_dtype):
    inv_sqrt2 = 1.0 / math.sqrt(2.0)

    def kernel(x_ref, w1_ref, b1_ref, w2_ref, b2_ref, o_ref, acc_ref):
        h_idx = pl.program_id(1)

        @pl.when(h_idx == 0)
        def _init():
            acc_ref[...] = jnp.zeros_like(acc_ref)

        # fc1 on this (tile_m, tile_h) hidden slab; x cast to the MXU dtype in-kernel.
        xt = x_ref[...].astype(matmul_dtype)
        hid = jnp.dot(xt, w1_ref[...], preferred_element_type=jnp.float32)
        hid = hid + b1_ref[...]  # (1, tile_h) f32 broadcast
        # Exact erf-based GELU (torch.nn.GELU default), kept in f32.
        hid = 0.5 * hid * (1.0 + jax.lax.erf(hid * inv_sqrt2))
        # Partial fc2 contribution of this hidden slab, accumulated in f32.
        acc_ref[...] += jnp.dot(hid.astype(matmul_dtype), w2_ref[...],
                                preferred_element_type=jnp.float32)

        @pl.when(h_idx == pl.num_programs(1) - 1)
        def _finish():
            o_ref[...] = (acc_ref[...] + b2_ref[...]).astype(o_ref.dtype)

    return kernel


def mlp_pallas(x, w1, b1, w2, b2, *, tile_m=512, matmul_dtype=jnp.bfloat16):
    """x: (B, N, D); w1: (D, H); b1: (H,); w2: (H, Dout); b2: (Dout,)."""
    B, N, D = x.shape
    H = w1.shape[1]
    Dout = w2.shape[1]
    M = B * N
    out_dtype = x.dtype

    xsize = jnp.dtype(x.dtype).itemsize
    msize = jnp.dtype(matmul_dtype).itemsize
    osize = jnp.dtype(out_dtype).itemsize

    budget = _vmem_budget_bytes()
    tm, th = _select_tiles(M, D, H, Dout, xsize, msize, osize, budget, tile_m)
    n_m = pl.cdiv(M, tm)
    n_h = H // th
    resident = (n_h == 1)

    # x stays in its original dtype (cast happens in-kernel); no pad / slice — the
    # ragged last row tile is handled by Pallas's masked writeback.
    x2d = x.reshape(M, D)
    w1c = w1.astype(matmul_dtype)
    w2c = w2.astype(matmul_dtype)
    b1_2d = b1.reshape(1, H).astype(jnp.float32)
    b2_2d = b2.reshape(1, Dout).astype(jnp.float32)

    cost = pl.CostEstimate(
        flops=2 * M * (D * H + H * Dout),
        transcendentals=M * H,  # one erf per hidden element
        bytes_accessed=(M * D * xsize + M * Dout * osize
                        + n_m * (D * H + H * Dout) * msize + (H + Dout) * 4),
    )

    kernel = _make_mlp_kernel(matmul_dtype)

    def build(single_buffer_weights):
        wkw = {"pipeline_mode": pl.Buffered(1)} if single_buffer_weights else {}
        grid_spec = pltpu.PrefetchScalarGridSpec(
            num_scalar_prefetch=0,
            grid=(n_m, n_h),
            in_specs=[
                pl.BlockSpec((tm, D), lambda i, h: (i, 0)),            # x row tile
                pl.BlockSpec((D, th), lambda i, h: (0, h), **wkw),     # w1 hidden slab
                pl.BlockSpec((1, th), lambda i, h: (0, h), **wkw),     # b1 slab
                pl.BlockSpec((th, Dout), lambda i, h: (h, 0), **wkw),  # w2 hidden slab
                pl.BlockSpec((1, Dout), lambda i, h: (0, 0), **wkw),   # b2
            ],
            out_specs=pl.BlockSpec((tm, Dout), lambda i, h: (i, 0)),
            scratch_shapes=[pltpu.VMEM((tm, Dout), jnp.float32)],
        )
        # TODO(synk): for small M on v7x, "parallel" on the row axis duplicates resident
        # weights in each core's private VMEM; a Dout-split axis would avoid that.
        return pl.pallas_call(
            kernel,
            out_shape=jax.ShapeDtypeStruct((M, Dout), out_dtype),
            grid_spec=grid_spec,
            compiler_params=pltpu.CompilerParams(
                dimension_semantics=("parallel", "arbitrary"),
                vmem_limit_bytes=budget,
            ),
            cost_estimate=cost,
        )

    out2d = None
    if resident:
        # Single-buffer the VMEM-resident weights/biases (grid-invariant blocks);
        # fall back to default double-buffering if this Pallas version rejects it.
        try:
            out2d = build(True)(x2d, w1c, b1_2d, w2c, b2_2d)
        except Exception:
            out2d = None
    if out2d is None:
        out2d = build(False)(x2d, w1c, b1_2d, w2c, b2_2d)

    return out2d.reshape(B, N, Dout)


def mlp_reference(x, w1, b1, w2, b2):
    hp = jax.lax.Precision.HIGHEST
    h = jnp.einsum("bnd,dh->bnh", x, w1, precision=hp) + b1
    h = 0.5 * h * (1.0 + jax.lax.erf(h / math.sqrt(2.0)))
    return jnp.einsum("bnh,ho->bno", h, w2, precision=hp) + b2


if __name__ == "__main__":
    # Small shapes consistent with a transformer MLP block:
    # batch=2, seq=8, in_features=32, hidden_features=64 (out_features == in_features)
    B, N, D, H = 2, 8, 32, 64

    key = jax.random.PRNGKey(0)
    kx, kw1, kb1, kw2, kb2 = jax.random.split(key, 5)

    x = jax.random.normal(kx, (B, N, D), dtype=jnp.float32)
    # deterministic init (roughly matching nn.Linear's uniform fan-in scaling)
    w1 = jax.random.uniform(kw1, (D, H), jnp.float32, -1.0, 1.0) / math.sqrt(D)
    b1 = jax.random.uniform(kb1, (H,), jnp.float32, -1.0, 1.0) / math.sqrt(D)
    w2 = jax.random.uniform(kw2, (H, D), jnp.float32, -1.0, 1.0) / math.sqrt(H)
    b2 = jax.random.uniform(kb2, (D,), jnp.float32, -1.0, 1.0) / math.sqrt(H)

    ref = mlp_reference(x, w1, b1, w2, b2)

    # Default (performance) path: bf16 MXU operands, f32 accumulation, in-kernel cast.
    out_bf16 = mlp_pallas(x, w1, b1, w2, b2)
    jax.block_until_ready(out_bf16)
    assert out_bf16.shape == (B, N, D)
    assert jnp.allclose(out_bf16, ref, atol=5e-2, rtol=5e-2), "bf16 path mismatch"

    # Ragged row count (M=14, not a multiple of the row tile) + f32 operand path.
    x_odd = x[:, :7, :]
    out_f32 = mlp_pallas(x_odd, w1, b1, w2, b2, matmul_dtype=jnp.float32)
    jax.block_until_ready(out_f32)
    ref_odd = mlp_reference(x_odd, w1, b1, w2, b2)
    assert out_f32.shape == (B, 7, D)
    assert jnp.allclose(out_f32, ref_odd, atol=1e-2, rtol=1e-2), "ragged/f32 path mismatch"

    print("KERNEL_OK")
</pallas_src>

<mosaic_0001>
module attributes {stable_mosaic.version = 11 : i64} {
  func.func @kernel(%arg0: i32, %arg1: i32, %arg2: memref<16x32xf32, #tpu.memory_space<vmem>>, %arg3: memref<32x64xbf16, #tpu.memory_space<vmem>>, %arg4: memref<1x64xf32, #tpu.memory_space<vmem>>, %arg5: memref<64x32xbf16, #tpu.memory_space<vmem>>, %arg6: memref<1x32xf32, #tpu.memory_space<vmem>>, %arg7: memref<16x32xf32, #tpu.memory_space<vmem>>, %arg8: memref<16x32xf32, #tpu.memory_space<vmem>>) attributes {dimension_semantics = [#tpu.dimension_semantics<parallel>, #tpu.dimension_semantics<arbitrary>], iteration_bounds = array<i64: 1, 1>, scalar_prefetch = 0 : i64, scratch_operands = 1 : i64, tpu.core_type = #tpu.core_type<tc>, window_params = [{transform_indices = @transform_0, window_bounds = array<i64: 16, 32>}, {pipeline_mode = #tpu.pipeline_mode<synchronous>, transform_indices = @transform_1, window_bounds = array<i64: 32, 64>}, {pipeline_mode = #tpu.pipeline_mode<synchronous>, transform_indices = @transform_2, window_bounds = array<i64: 1, 64>}, {pipeline_mode = #tpu.pipeline_mode<synchronous>, transform_indices = @transform_3, window_bounds = array<i64: 64, 32>}, {pipeline_mode = #tpu.pipeline_mode<synchronous>, transform_indices = @transform_4, window_bounds = array<i64: 1, 32>}, {transform_indices = @transform_5, window_bounds = array<i64: 16, 32>}]} {
    %c0_i32 = arith.constant 0 : i32
    %0 = arith.cmpi eq, %arg1, %c0_i32 : i32
    %1 = arith.extui %0 : i1 to i32
    %c0_i32_0 = arith.constant 0 : i32
    %2 = arith.cmpi ne, %1, %c0_i32_0 : i32
    scf.if %2 {
      %cst_18 = arith.constant 0.000000e+00 : f32
      %27 = vector.broadcast %cst_18 : f32 to vector<16x32xf32>
      %c0_19 = arith.constant 0 : index
      %c0_20 = arith.constant 0 : index
      %28 = vector.load %arg8[%c0_19, %c0_20] : memref<16x32xf32, #tpu.memory_space<vmem>>, vector<16x32xf32>
      tpu.vector_store %arg8[%c0_19, %c0_20], %27 {strides = array<i32>} : memref<16x32xf32, #tpu.memory_space<vmem>>, vector<16x32xf32>,
    } else {
    }
    %c0 = arith.constant 0 : index
    %c0_1 = arith.constant 0 : index
    %3 = vector.load %arg2[%c0, %c0_1] : memref<16x32xf32, #tpu.memory_space<vmem>>, vector<16x32xf32>
    %4 = arith.truncf %3 : vector<16x32xf32> to vector<16x32xbf16>
    %c0_2 = arith.constant 0 : index
    %c0_3 = arith.constant 0 : index
    %5 = vector.load %arg3[%c0_2, %c0_3] : memref<32x64xbf16, #tpu.memory_space<vmem>>, vector<32x64xbf16>
    %cst = arith.constant dense<0.000000e+00> : vector<16x64xf32>
    %6 = tpu.matmul %4, %5, %cst {dimension_numbers = #tpu.dot_dimension_numbers<[1], [0], [0], [1], [0, 0, 1, 1], [], []>} : vector<16x32xbf16>, vector<32x64xbf16>, vector<16x64xf32> -> vector<16x64xf32>
    %c0_4 = arith.constant 0 : index
    %c0_5 = arith.constant 0 : index
    %7 = vector.load %arg4[%c0_4, %c0_5] : memref<1x64xf32, #tpu.memory_space<vmem>>, vector<1x64xf32>
    %8 = vector.broadcast %7 : vector<1x64xf32> to vector<16x64xf32>
    %9 = arith.addf %6, %8 : vector<16x64xf32>
    %cst_6 = arith.constant 5.000000e-01 : f32
    %10 = vector.broadcast %cst_6 : f32 to vector<16x64xf32>
    %11 = arith.mulf %10, %9 : vector<16x64xf32>
    %cst_7 = arith.constant 0.707106769 : f32
    %12 = vector.broadcast %cst_7 : f32 to vector<16x64xf32>
    %13 = arith.mulf %9, %12 : vector<16x64xf32>
    %14 = math.erf %13 : vector<16x64xf32>
    %cst_8 = arith.constant 1.000000e+00 : f32
    %15 = vector.broadcast %cst_8 : f32 to vector<16x64xf32>
    %16 = arith.addf %15, %14 : vector<16x64xf32>
    %17 = arith.mulf %11, %16 : vector<16x64xf32>
    %c0_9 = arith.constant 0 : index
    %c0_10 = arith.constant 0 : index
    %18 = vector.load %arg8[%c0_9, %c0_10] : memref<16x32xf32, #tpu.memory_space<vmem>>, vector<16x32xf32>
    %19 = arith.truncf %17 : vector<16x64xf32> to vector<16x64xbf16>
    %c0_11 = arith.constant 0 : index
    %c0_12 = arith.constant 0 : index
    %20 = vector.load %arg5[%c0_11, %c0_12] : memref<64x32xbf16, #tpu.memory_space<vmem>>, vector<64x32xbf16>
    %cst_13 = arith.constant dense<0.000000e+00> : vector<16x32xf32>
    %21 = tpu.matmul %19, %20, %cst_13 {dimension_numbers = #tpu.dot_dimension_numbers<[1], [0], [0], [1], [0, 0, 1, 1], [], []>} : vector<16x64xbf16>, vector<64x32xbf16>, vector<16x32xf32> -> vector<16x32xf32>
    %22 = arith.addf %18, %21 : vector<16x32xf32>
    %c0_14 = arith.constant 0 : index
    %c0_15 = arith.constant 0 : index
    %23 = vector.load %arg8[%c0_14, %c0_15] : memref<16x32xf32, #tpu.memory_space<vmem>>, vector<16x32xf32>
    tpu.vector_store %arg8[%c0_14, %c0_15], %22 {strides = array<i32>} : memref<16x32xf32, #tpu.memory_space<vmem>>, vector<16x32xf32>,
    %c0_i32_16 = arith.constant 0 : i32
    %24 = arith.cmpi eq, %arg1, %c0_i32_16 : i32
    %25 = arith.extui %24 : i1 to i32
    %c0_i32_17 = arith.constant 0 : i32
    %26 = arith.cmpi ne, %25, %c0_i32_17 : i32
    scf.if %26 {
      %c0_18 = arith.constant 0 : index
      %c0_19 = arith.constant 0 : index
      %27 = vector.load %arg8[%c0_18, %c0_19] : memref<16x32xf32, #tpu.memory_space<vmem>>, vector<16x32xf32>
      %c0_20 = arith.constant 0 : index
      %c0_21 = arith.constant 0 : index
      %28 = vector.load %arg6[%c0_20, %c0_21] : memref<1x32xf32, #tpu.memory_space<vmem>>, vector<1x32xf32>
      %29 = vector.broadcast %28 : vector<1x32xf32> to vector<16x32xf32>
      %30 = arith.addf %27, %29 : vector<16x32xf32>
      %c0_22 = arith.constant 0 : index
      %c0_23 = arith.constant 0 : index
      %31 = vector.load %arg7[%c0_22, %c0_23] : memref<16x32xf32, #tpu.memory_space<vmem>>, vector<16x32xf32>
      tpu.vector_store %arg7[%c0_22, %c0_23], %30 {strides = array<i32>} : memref<16x32xf32, #tpu.memory_space<vmem>>, vector<16x32xf32>,
    } else {
    }
    return
  }
  func.func @transform_0(%arg0: i32, %arg1: i32) -> (i32, i32) {
    %c0_i32 = arith.constant 0 : i32
    %c0_i32_0 = arith.constant 0 : i32
    return %arg0, %c0_i32 : i32, i32
  }
  func.func @transform_1(%arg0: i32, %arg1: i32) -> (i32, i32) {
    %c0_i32 = arith.constant 0 : i32
    %c0_i32_0 = arith.constant 0 : i32
    return %c0_i32, %arg1 : i32, i32
  }
  func.func @transform_2(%arg0: i32, %arg1: i32) -> (i32, i32) {
    %c0_i32 = arith.constant 0 : i32
    %c0_i32_0 = arith.constant 0 : i32
    return %c0_i32, %arg1 : i32, i32
  }
  func.func @transform_3(%arg0: i32, %arg1: i32) -> (i32, i32) {
    %c0_i32 = arith.constant 0 : i32
    %c0_i32_0 = arith.constant 0 : i32
    return %arg1, %c0_i32 : i32, i32
  }
  func.func @transform_4(%arg0: i32, %arg1: i32) -> (i32, i32) {
    %c0_i32 = arith.constant 0 : i32
    %c0_i32_0 = arith.constant 0 : i32
    %c0_i32_1 = arith.constant 0 : i32
    return %c0_i32, %c0_i32_0 : i32, i32
  }
  func.func @transform_5(%arg0: i32, %arg1: i32) -> (i32, i32) {
    %c0_i32 = arith.constant 0 : i32
    %c0_i32_0 = arith.constant 0 : i32
    return %arg0, %c0_i32 : i32, i32
  }
}

module attributes {stable_mosaic.version = 11 : i64} {
  func.func @kernel(%arg0: i32, %arg1: i32, %arg2: memref<16x32xf32, #tpu.memory_space<vmem>>, %arg3: memref<32x64xbf16, #tpu.memory_space<vmem>>, %arg4: memref<1x64xf32, #tpu.memory_space<vmem>>, %arg5: memref<64x32xbf16, #tpu.memory_space<vmem>>, %arg6: memref<1x32xf32, #tpu.memory_space<vmem>>, %arg7: memref<16x32xf32, #tpu.memory_space<vmem>>, %arg8: memref<16x32xf32, #tpu.memory_space<vmem>>) attributes {dimension_semantics = [#tpu.dimension_semantics<parallel>, #tpu.dimension_semantics<arbitrary>], iteration_bounds = array<i64: 1, 1>, scalar_prefetch = 0 : i64, scratch_operands = 1 : i64, tpu.core_type = #tpu.core_type<tc>, window_params = [{transform_indices = @transform_0, window_bounds = array<i64: 16, 32>}, {transform_indices = @transform_1, window_bounds = array<i64: 32, 64>}, {transform_indices = @transform_2, window_bounds = array<i64: 1, 64>}, {transform_indices = @transform_3, window_bounds = array<i64: 64, 32>}, {pipeline_mode = #tpu.pipeline_mode<synchronous>, transform_indices = @transform_4, window_bounds = array<i64: 1, 32>}, {transform_indices = @transform_5, window_bounds = array<i64: 16, 32>}]} {
    %c0_i32 = arith.constant 0 : i32
    %0 = arith.cmpi eq, %arg1, %c0_i32 : i32
    %1 = arith.extui %0 : i1 to i32
    %c0_i32_0 = arith.constant 0 : i32
    %2 = arith.cmpi ne, %1, %c0_i32_0 : i32
    scf.if %2 {
      %cst_18 = arith.constant 0.000000e+00 : f32
      %27 = vector.broadcast %cst_18 : f32 to vector<16x32xf32>
      %c0_19 = arith.constant 0 : index
      %c0_20 = arith.constant 0 : index
      %28 = vector.load %arg8[%c0_19, %c0_20] : memref<16x32xf32, #tpu.memory_space<vmem>>, vector<16x32xf32>
      tpu.vector_store %arg8[%c0_19, %c0_20], %27 {strides = array<i32>} : memref<16x32xf32, #tpu.memory_space<vmem>>, vector<16x32xf32>,
    } else {
    }
    %c0 = arith.constant 0 : index
    %c0_1 = arith.constant 0 : index
    %3 = vector.load %arg2[%c0, %c0_1] : memref<16x32xf32, #tpu.memory_space<vmem>>, vector<16x32xf32>
    %4 = arith.truncf %3 : vector<16x32xf32> to vector<16x32xbf16>
    %c0_2 = arith.constant 0 : index
    %c0_3 = arith.constant 0 : index
    %5 = vector.load %arg3[%c0_2, %c0_3] : memref<32x64xbf16, #tpu.memory_space<vmem>>, vector<32x64xbf16>
    %cst = arith.constant dense<0.000000e+00> : vector<16x64xf32>
    %6 = tpu.matmul %4, %5, %cst {dimension_numbers = #tpu.dot_dimension_numbers<[1], [0], [0], [1], [0, 0, 1, 1], [], []>} : vector<16x32xbf16>, vector<32x64xbf16>, vector<16x64xf32> -> vector<16x64xf32>
    %c0_4 = arith.constant 0 : index
    %c0_5 = arith.constant 0 : index
    %7 = vector.load %arg4[%c0_4, %c0_5] : memref<1x64xf32, #tpu.memory_space<vmem>>, vector<1x64xf32>
    %8 = vector.broadcast %7 : vector<1x64xf32> to vector<16x64xf32>
    %9 = arith.addf %6, %8 : vector<16x64xf32>
    %cst_6 = arith.constant 5.000000e-01 : f32
    %10 = vector.broadcast %cst_6 : f32 to vector<16x64xf32>
    %11 = arith.mulf %10, %9 : vector<16x64xf32>
    %cst_7 = arith.constant 0.707106769 : f32
    %12 = vector.broadcast %cst_7 : f32 to vector<16x64xf32>
    %13 = arith.mulf %9, %12 : vector<16x64xf32>
    %14 = math.erf %13 : vector<16x64xf32>
    %cst_8 = arith.constant 1.000000e+00 : f32
    %15 = vector.broadcast %cst_8 : f32 to vector<16x64xf32>
    %16 = arith.addf %15, %14 : vector<16x64xf32>
    %17 = arith.mulf %11, %16 : vector<16x64xf32>
    %c0_9 = arith.constant 0 : index
    %c0_10 = arith.constant 0 : index
    %18 = vector.load %arg8[%c0_9, %c0_10] : memref<16x32xf32, #tpu.memory_space<vmem>>, vector<16x32xf32>
    %19 = arith.truncf %17 : vector<16x64xf32> to vector<16x64xbf16>
    %c0_11 = arith.constant 0 : index
    %c0_12 = arith.constant 0 : index
    %20 = vector.load %arg5[%c0_11, %c0_12] : memref<64x32xbf16, #tpu.memory_space<vmem>>, vector<64x32xbf16>
    %cst_13 = arith.constant dense<0.000000e+00> : vector<16x32xf32>
    %21 = tpu.matmul %19, %20, %cst_13 {dimension_numbers = #tpu.dot_dimension_numbers<[1], [0], [0], [1], [0, 0, 1, 1], [], []>} : vector<16x64xbf16>, vector<64x32xbf16>, vector<16x32xf32> -> vector<16x32xf32>
    %22 = arith.addf %18, %21 : vector<16x32xf32>
    %c0_14 = arith.constant 0 : index
    %c0_15 = arith.constant 0 : index
    %23 = vector.load %arg8[%c0_14, %c0_15] : memref<16x32xf32, #tpu.memory_space<vmem>>, vector<16x32xf32>
    tpu.vector_store %arg8[%c0_14, %c0_15], %22 {strides = array<i32>} : memref<16x32xf32, #tpu.memory_space<vmem>>, vector<16x32xf32>,
    %c0_i32_16 = arith.constant 0 : i32
    %24 = arith.cmpi eq, %arg1, %c0_i32_16 : i32
    %25 = arith.extui %24 : i1 to i32
    %c0_i32_17 = arith.constant 0 : i32
    %26 = arith.cmpi ne, %25, %c0_i32_17 : i32
    scf.if %26 {
      %c0_18 = arith.constant 0 : index
      %c0_19 = arith.constant 0 : index
      %27 = vector.load %arg8[%c0_18, %c0_19] : memref<16x32xf32, #tpu.memory_space<vmem>>, vector<16x32xf32>
      %c0_20 = arith.constant 0 : index
      %c0_21 = arith.constant 0 : index
      %28 = vector.load %arg6[%c0_20, %c0_21] : memref<1x32xf32, #tpu.memory_space<vmem>>, vector<1x32xf32>
      %29 = vector.broadcast %28 : vector<1x32xf32> to vector<16x32xf32>
      %30 = arith.addf %27, %29 : vector<16x32xf32>
      %c0_22 = arith.constant 0 : index
      %c0_23 = arith.constant 0 : index
      %31 = vector.load %arg7[%c0_22, %c0_23] : memref<16x32xf32, #tpu.memory_space<vmem>>, vector<16x32xf32>
      tpu.vector_store %arg7[%c0_22, %c0_23], %30 {strides = array<i32>} : memref<16x32xf32, #tpu.memory_space<vmem>>, vector<16x32xf32>,
    } else {
    }
    return
  }
  func.func @transform_0(%arg0: i32, %arg1: i32) -> (i32, i32) {
    %c0_i32 = arith.constant 0 : i32
    %c0_i32_0 = arith.constant 0 : i32
    return %arg0, %c0_i32 : i32, i32
  }
  func.func @transform_1(%arg0: i32, %arg1: i32) -> (i32, i32) {
    %c0_i32 = arith.constant 0 : i32
    %c0_i32_0 = arith.constant 0 : i32
    return %c0_i32, %arg1 : i32, i32
  }
  func.func @transform_2(%arg0: i32, %arg1: i32) -> (i32, i32) {
    %c0_i32 = arith.constant 0 : i32
    %c0_i32_0 = arith.constant 0 : i32
    return %c0_i32, %arg1 : i32, i32
  }
  func.func @transform_3(%arg0: i32, %arg1: i32) -> (i32, i32) {
    %c0_i32 = arith.constant 0 : i32
    %c0_i32_0 = arith.constant 0 : i32
    return %arg1, %c0_i32 : i32, i32
  }
  func.func @transform_4(%arg0: i32, %arg1: i32) -> (i32, i32) {
    %c0_i32 = arith.constant 0 : i32
    %c0_i32_0 = arith.constant 0 : i32
    %c0_i32_1 = arith.constant 0 : i32
    return %c0_i32, %c0_i32_0 : i32, i32
  }
  func.func @transform_5(%arg0: i32, %arg1: i32) -> (i32, i32) {
    %c0_i32 = arith.constant 0 : i32
    %c0_i32_0 = arith.constant 0 : i32
    return %arg0, %c0_i32 : i32, i32
  }
}

</mosaic_0001>

<bundles_post_ra>
// kernel: tpu_custom_call.1
= control target key start
LH: loop header
LB: loop body
LE: loop exit
PB: predicated region body
PF: predicated region fallthrough
CT: control target
= control target key end

     0   :  { %v301_v1 = vmov 0.0   ;;  %vm302_vm0 = vmmov 0   ;;  %vm26_vm1 = vcmask 261120   ;;  %s376_s0 = inlined_call_operand.vmem [shape: f32[16,32], index: 0, kind: input, shape index: {}]   ;;  %s377_s1 = inlined_call_operand.vmem [shape: bf16[32,64], index: 1, kind: input, shape index: {}]   ;;  %s378_s2 = inlined_call_operand.vmem [shape: f32[1,64], index: 2, kind: input, shape index: {}]   ;;  %s379_s3 = inlined_call_operand.vmem [shape: bf16[64,32], index: 3, kind: input, shape index: {}]   ;;  %s380_s4 = inlined_call_operand.vmem [shape: f32[1,32], index: 4, kind: input, shape index: {}]   ;;  %s381_s5 = inlined_call_operand.hbm [shape: f32[16,32], index: 5, kind: output, shape index: {}]  }
   0x1   :  { %v269_v0 = vld [vmem:[%s377_s1 + $0x8] sm:$0xff]   ;;  %244 = vmatprep.subr.bf16.mxu0 %v301_v1  ;;  %252 = vmatprep.subr.bf16.mxu1 %v301_v1  ;;  %v270_v2 = vld [vmem:[%s377_s1] sm:$0xff]   ;;  %27 = vst.msk [vmem:[#allocation2] sm:$0xff] %vm26_vm1, %v301_v1  ;;  %28 = vst.msk [vmem:[#allocation2 + $0x8] sm:$0xff] %vm26_vm1, %v301_v1 }
   0x2   :  { %245 = vmatpush3.bf16.msra.mxu0 %v269_v0  ;;  %248 = vmatprep.mubr.msk.bf16.mxu0 %vm302_vm0, %v301_v1  ;;  %v29_v3 = vld [vmem:[%s376_s0] sm:$0xff]  ;;  %v30_v4 = vld [vmem:[%s376_s0 + $0x8] sm:$0xff] }
   0x3   :  { %246 = vmatprep.subr.bf16.mxu0 %v301_v1  ;;  %260 = vmatprep.mubr.msk.bf16.mxu1 %vm302_vm0, %v301_v1  ;;  %v31_v5 = vpack.c.bf16 %v30_v4, %v29_v3 }
   0x4   :  { %10 = vsyncpa [#allocation4], 0  ;;  %v271_v6 = vld [vmem:[%s379_s3 + $0x18] sm:$0xff]   ;;  %v272_v7 = vld [vmem:[%s379_s3 + $0x10] sm:$0xff]   ;;  %vm145_vm2 = vcmask 523264   ;;  %s303_s9 = smov [#allocation3]  }
   0x5   :  { %253 = vmatpush3.bf16.msra.mxu1 %v271_v6  ;;  %v273_v8 = vld [vmem:[%s379_s3 + $0x8] sm:$0xff]   ;;  %v274_v9 = vld [vmem:[%s379_s3] sm:$0xff]   ;;  %s215_s10 = sshll.u32 %s303_s9, 4  ;;  %s216_s10 = int_to_ptr.vmem [resolvable:$true] %s215_s10 }
   0x6   :  { %247 = vmatpush3.bf16.msra.mxu0 %v270_v2  ;;  %254 = vmatprep.subr.bf16.mxu1 %v301_v1  ;;  %v226_v10 = vld [vmem:[%s378_s2] ss:$0 sm:$0xff]  ;;  %s279_s11 = scalar_lea.vmem %s216_s10, 256  ;;  %p284_p1 = scmp.lt.s32.totalorder %s216_s10, %s216_s10 }
   0x7   :  { %v235_v36 = vld [vmem:[%s380_s4] ss:$0 sm:$0xff]  ;;  %p280_p0 = scmp.ne.s32.totalorder %s216_s10, %s279_s11  ;;  %p285_p2 = scmp.lt.s32.totalorder %s279_s11, %s279_s11 }
   0x8   :  { %v110_v28 = vld [vmem:[#allocation2] sm:$0xff]  ;;  %v111_v32 = vld [vmem:[#allocation2 + $0x8] sm:$0xff] }
   0x9   :  { %249 = vmatmul.mubr.msk.bf16.vlgmr.msra.gmra.mxu0 %vm26_vm1, %v31_v5  ;;  %255 = vmatpush3.bf16.msra.mxu1 %v272_v7  ;;  %p286_p3 = por %p285_p2, %p284_p1 }
   0xa   :  { %256 = vmatprep.subr.bf16.mxu1 %v301_v1 }
   0xb   :  { %p287_p4 = pnand %p286_p3, %p280_p0 }
   0xd   :  { %257 = vmatpush3.bf16.msra.mxu1 %v273_v8 }
   0xe   :  { %258 = vmatprep.subr.bf16.mxu1 %v301_v1 }
  0x11   :  { %259 = vmatpush3.bf16.msra.mxu1 %v274_v9 }
  0xc9   :  { %v93_v11 = vpop.f32.mrf.mxu0 }
  0xca   :  { %v94_v12 = vadd.f32 %v226_v10, %v93_v11 }
  0xcb   :  { %v250_v13 = vpop.f32.mrf.mxu0 }
  0xcc   :  { %v102_v14 = vmul.f32 0.70710677, %v94_v12  ;;  %v100_v22 = vmul.f32 0.5, %v94_v12 }
  0xcd   :  { %v96_v15 = vpop.f32.mrf.mxu0 }
  0xce   :  { %275 = verf.f32 %v102_v14  ;;  %v97_v16 = vadd.f32 %v226_v10, %v96_v15 }
  0xcf   :  { %v251_v17 = vpop.f32.mrf.mxu0 }
  0xd0   :  { %v103_v18 = vmul.f32 0.70710677, %v97_v16  ;;  %v101_v23 = vmul.f32 0.5, %v97_v16 }
  0xd2   :  { %277 = verf.f32 %v103_v18 }
  0xdb   :  { %v276_v19 = vpop.eup %275 }
  0xdc   :  { %v106_v20 = vadd.f32 1.0, %v276_v19 }
  0xde   :  { %v108_v25 = vmul.f32 %v106_v20, %v100_v22 }
  0xdf   :  { %v278_v21 = vpop.eup %277 }
  0xe0   :  { %v107_v24 = vadd.f32 1.0, %v278_v21 }
  0xe2   :  { %v109_v26 = vmul.f32 %v107_v24, %v101_v23 }
  0xe4   :  { %v112_v27 = vpack.c.bf16 %v109_v26, %v108_v25 }
  0xe6   :  { %261 = vmatmul.mubr.msk.bf16.vlgmr.msra.gmra.mxu1 %vm145_vm2, %v112_v27 }
 0x1a6   :  { %v183_v29 = vpop.f32.mrf.mxu1 }
 0x1a7   :  { %v190_v30 = vadd.f32 %v183_v29, %v110_v28 }
 0x1a8   :  { %v262_v31 = vpop.f32.mrf.mxu1 }
 0x1a9   :  { %192 = vst.msk [vmem:[#allocation2] sm:$0xff] %vm26_vm1, %v190_v30 }
 0x1aa   :  { %v186_v33 = vpop.f32.mrf.mxu1 }
 0x1ab   :  { %v191_v34 = vadd.f32 %v186_v33, %v111_v32 }
 0x1ac   :  { %v263_v35 = vpop.f32.mrf.mxu1 }
 0x1ad   :  { %193 = vst.msk [vmem:[#allocation2 + $0x8] sm:$0xff] %vm26_vm1, %v191_v34 }
 0x1b0   :  { %v197_v37 = vld [vmem:[#allocation2] sm:$0xff] }
 0x1b1   :  { %v206_v38 = vadd.f32 %v235_v36, %v197_v37 }
 0x1b3   :  { %208 = vst.msk [vmem:[#allocation3] sm:$0xff] %vm26_vm1, %v206_v38 }
 0x1b4   :  { %v198_v39 = vld [vmem:[#allocation2 + $0x8] sm:$0xff] }
 0x1b5   :  { %v207_v40 = vadd.f32 %v235_v36, %v198_v39 }
 0x1b7   :  { %209 = vst.msk [vmem:[#allocation3 + $0x8] sm:$0xff] %vm26_vm1, %v207_v40 }
 0x1b8   :  { %290 = shalt.err (!%p287_p4)
}
 0x1b9   :  { %s304_s12 = smov 128   ;;  %s305_s4 = smov 8  }
 0x1ba   :  { %221 = dma.vmem_to_hbm [thread:$0]  %s216_s10, 256, %s381_s5, [#allocation4], %s304_s12, %s304_s12, %s305_s4  }
 0x1bb   :  { %299 = dma.done.wait [#allocation4], 256  }
 0x1bc   :  { %300 = vsyncadd [#allocation4], 4294967040 }
 0x1bd   :  { %225 = vsyncpa [#allocation4], 1 }

// kernel: tpu_custom_call.1
= control target key start
LH: loop header
LB: loop body
LE: loop exit
PB: predicated region body
PF: predicated region fallthrough
CT: control target
= control target key end

     0   :  { %v301_v1 = vmov 0.0   ;;  %vm302_vm0 = vmmov 0   ;;  %vm26_vm1 = vcmask 261120   ;;  %s376_s0 = inlined_call_operand.vmem [shape: f32[16,32], index: 0, kind: input, shape index: {}]   ;;  %s377_s1 = inlined_call_operand.vmem [shape: bf16[32,64], index: 1, kind: input, shape index: {}]   ;;  %s378_s2 = inlined_call_operand.vmem [shape: f32[1,64], index: 2, kind: input, shape index: {}]   ;;  %s379_s3 = inlined_call_operand.vmem [shape: bf16[64,32], index: 3, kind: input, shape index: {}]   ;;  %s380_s4 = inlined_call_operand.vmem [shape: f32[1,32], index: 4, kind: input, shape index: {}]   ;;  %s381_s5 = inlined_call_operand.hbm [shape: f32[16,32], index: 5, kind: output, shape index: {}]  }
   0x1   :  { %v269_v0 = vld [vmem:[%s377_s1 + $0x8] sm:$0xff]   ;;  %244 = vmatprep.subr.bf16.mxu0 %v301_v1  ;;  %252 = vmatprep.subr.bf16.mxu1 %v301_v1  ;;  %v270_v2 = vld [vmem:[%s377_s1] sm:$0xff]   ;;  %27 = vst.msk [vmem:[#allocation2] sm:$0xff] %vm26_vm1, %v301_v1  ;;  %28 = vst.msk [vmem:[#allocation2 + $0x8] sm:$0xff] %vm26_vm1, %v301_v1 }
   0x2   :  { %245 = vmatpush3.bf16.msra.mxu0 %v269_v0  ;;  %248 = vmatprep.mubr.msk.bf16.mxu0 %vm302_vm0, %v301_v1  ;;  %v29_v3 = vld [vmem:[%s376_s0] sm:$0xff]  ;;  %v30_v4 = vld [vmem:[%s376_s0 + $0x8] sm:$0xff] }
   0x3   :  { %246 = vmatprep.subr.bf16.mxu0 %v301_v1  ;;  %260 = vmatprep.mubr.msk.bf16.mxu1 %vm302_vm0, %v301_v1  ;;  %v31_v5 = vpack.c.bf16 %v30_v4, %v29_v3 }
   0x4   :  { %10 = vsyncpa [#allocation4], 0  ;;  %v271_v6 = vld [vmem:[%s379_s3 + $0x18] sm:$0xff]   ;;  %v272_v7 = vld [vmem:[%s379_s3 + $0x10] sm:$0xff]   ;;  %vm145_vm2 = vcmask 523264   ;;  %s303_s9 = smov [#allocation3]  }
   0x5   :  { %253 = vmatpush3.bf16.msra.mxu1 %v271_v6  ;;  %v273_v8 = vld [vmem:[%s379_s3 + $0x8] sm:$0xff]   ;;  %v274_v9 = vld [vmem:[%s379_s3] sm:$0xff]   ;;  %s215_s10 = sshll.u32 %s303_s9, 4  ;;  %s216_s10 = int_to_ptr.vmem [resolvable:$true] %s215_s10 }
   0x6   :  { %247 = vmatpush3.bf16.msra.mxu0 %v270_v2  ;;  %254 = vmatprep.subr.bf16.mxu1 %v301_v1  ;;  %v226_v10 = vld [vmem:[%s378_s2] ss:$0 sm:$0xff]  ;;  %s279_s11 = scalar_lea.vmem %s216_s10, 256  ;;  %p284_p1 = scmp.lt.s32.totalorder %s216_s10, %s216_s10 }
   0x7   :  { %v235_v36 = vld [vmem:[%s380_s4] ss:$0 sm:$0xff]  ;;  %p280_p0 = scmp.ne.s32.totalorder %s216_s10, %s279_s11  ;;  %p285_p2 = scmp.lt.s32.totalorder %s279_s11, %s279_s11 }
   0x8   :  { %v110_v28 = vld [vmem:[#allocation2] sm:$0xff]  ;;  %v111_v32 = vld [vmem:[#allocation2 + $0x8] sm:$0xff] }
   0x9   :  { %249 = vmatmul.mubr.msk.bf16.vlgmr.msra.gmra.mxu0 %vm26_vm1, %v31_v5  ;;  %255 = vmatpush3.bf16.msra.mxu1 %v272_v7  ;;  %p286_p3 = por %p285_p2, %p284_p1 }
   0xa   :  { %256 = vmatprep.subr.bf16.mxu1 %v301_v1 }
   0xb   :  { %p287_p4 = pnand %p286_p3, %p280_p0 }
   0xd   :  { %257 = vmatpush3.bf16.msra.mxu1 %v273_v8 }
   0xe   :  { %258 = vmatprep.subr.bf16.mxu1 %v301_v1 }
  0x11   :  { %259 = vmatpush3.bf16.msra.mxu1 %v274_v9 }
  0xc9   :  { %v93_v11 = vpop.f32.mrf.mxu0 }
  0xca   :  { %v94_v12 = vadd.f32 %v226_v10, %v93_v11 }
  0xcb   :  { %v250_v13 = vpop.f32.mrf.mxu0 }
  0xcc   :  { %v102_v14 = vmul.f32 0.70710677, %v94_v12  ;;  %v100_v22 = vmul.f32 0.5, %v94_v12 }
  0xcd   :  { %v96_v15 = vpop.f32.mrf.mxu0 }
  0xce   :  { %275 = verf.f32 %v102_v14  ;;  %v97_v16 = vadd.f32 %v226_v10, %v96_v15 }
  0xcf   :  { %v251_v17 = vpop.f32.mrf.mxu0 }
  0xd0   :  { %v103_v18 = vmul.f32 0.70710677, %v97_v16  ;;  %v101_v23 = vmul.f32 0.5, %v97_v16 }
  0xd2   :  { %277 = verf.f32 %v103_v18 }
  0xdb   :  { %v276_v19 = vpop.eup %275 }
  0xdc   :  { %v106_v20 = vadd.f32 1.0, %v276_v19 }
  0xde   :  { %v108_v25 = vmul.f32 %v106_v20, %v100_v22 }
  0xdf   :  { %v278_v21 = vpop.eup %277 }
  0xe0   :  { %v107_v24 = vadd.f32 1.0, %v278_v21 }
  0xe2   :  { %v109_v26 = vmul.f32 %v107_v24, %v101_v23 }
  0xe4   :  { %v112_v27 = vpack.c.bf16 %v109_v26, %v108_v25 }
  0xe6   :  { %261 = vmatmul.mubr.msk.bf16.vlgmr.msra.gmra.mxu1 %vm145_vm2, %v112_v27 }
 0x1a6   :  { %v183_v29 = vpop.f32.mrf.mxu1 }
 0x1a7   :  { %v190_v30 = vadd.f32 %v183_v29, %v110_v28 }
 0x1a8   :  { %v262_v31 = vpop.f32.mrf.mxu1 }
 0x1a9   :  { %192 = vst.msk [vmem:[#allocation2] sm:$0xff] %vm26_vm1, %v190_v30 }
 0x1aa   :  { %v186_v33 = vpop.f32.mrf.mxu1 }
 0x1ab   :  { %v191_v34 = vadd.f32 %v186_v33, %v111_v32 }
 0x1ac   :  { %v263_v35 = vpop.f32.mrf.mxu1 }
 0x1ad   :  { %193 = vst.msk [vmem:[#allocation2 + $0x8] sm:$0xff] %vm26_vm1, %v191_v34 }
 0x1b0   :  { %v197_v37 = vld [vmem:[#allocation2] sm:$0xff] }
 0x1b1   :  { %v206_v38 = vadd.f32 %v235_v36, %v197_v37 }
 0x1b3   :  { %208 = vst.msk [vmem:[#allocation3] sm:$0xff] %vm26_vm1, %v206_v38 }
 0x1b4   :  { %v198_v39 = vld [vmem:[#allocation2 + $0x8] sm:$0xff] }
 0x1b5   :  { %v207_v40 = vadd.f32 %v235_v36, %v198_v39 }
 0x1b7   :  { %209 = vst.msk [vmem:[#allocation3 + $0x8] sm:$0xff] %vm26_vm1, %v207_v40 }
 0x1b8   :  { %290 = shalt.err (!%p287_p4)
}
 0x1b9   :  { %s304_s12 = smov 128   ;;  %s305_s4 = smov 8  }
 0x1ba   :  { %221 = dma.vmem_to_hbm [thread:$0]  %s216_s10, 256, %s381_s5, [#allocation4], %s304_s12, %s304_s12, %s305_s4  }
 0x1bb   :  { %299 = dma.done.wait [#allocation4], 256  }
 0x1bc   :  { %300 = vsyncadd [#allocation4], 4294967040 }
 0x1bd   :  { %225 = vsyncpa [#allocation4], 1 }

</bundles_post_ra>
